<compile_context>
chip_gen: v7x
topology: tpu7x:2x2x1
jax: 0.10.0
libtpu: 0.0.40
codegen_flags: <defaults>
</compile_context>

<pallas_src>
import functools

import jax
import jax.numpy as jnp
from jax.experimental import pallas as pl
from jax.experimental.pallas import tpu as pltpu


def _round_up(x, m):
    return (x + m - 1) // m * m


def _mlp_kernel(xt_ref, w1_ref, b1_ref, w2_ref, b2_ref, o_ref):
    # xt: (8, TB)   w1: (16, 8)   b1: (16, 1)   w2: (16, 1)   b2: (1, 1) in SMEM
    # o:  (1, TB)   -- batch lives on the 128-wide lane axis everywhere.
    x = xt_ref[...].astype(jnp.float32)           # no-op for f32, VPU cast for bf16
    h = jnp.dot(
        w1_ref[...], x,
        preferred_element_type=jnp.float32,
        precision=jax.lax.Precision.HIGHEST,      # f32 numerics; K=8, hidden under DMA
    )                                             # (16, TB) on the MXU
    h = jnp.maximum(h + b1_ref[...], 0.0)         # bias + ReLU on the VPU
    # fc2 has a single output feature: VPU multiply + 16-sublane reduce (XLU),
    # keeping the result lane-dense instead of an N=1 MXU matmul.
    y = jnp.sum(h * w2_ref[...], axis=0, keepdims=True) + b2_ref[0, 0]  # (1, TB)
    o_ref[...] = y.astype(o_ref.dtype)


def _choose_tiling(B, tile_b):
    """Pick (tile, b_pad): tile is a multiple of 128, tail padding < 128/step."""
    b128 = _round_up(max(B, 1), 128)
    # Cap keeps 128*tile working set well inside v7x's 64 MiB physical VMEM.
    tile_cap = max(128, min(_round_up(tile_b, 128), 262144))
    n_steps = -(-b128 // tile_cap)
    if n_steps == 1 and b128 >= 4096:
        n_steps = 2   # give v7x's second TensorCore a tile; negligible elsewhere
    tile = _round_up(-(-b128 // n_steps), 128)
    return tile, n_steps * tile


def _pallas_forward(xt, w1c, b1c, w2c, b2c, tile, b_pad, *, input_fusion=False):
    """xt: (8, b_pad) feature-major (f32 or bf16); weights/output in f32."""
    grid = (b_pad // tile,)
    # Working set: double-buffered (8,tile) input + double-buffered (1,tile)
    # output (sublane-padded 1->8) = ~128 B/lane, plus tiny resident weights.
    vmem_limit = int(min(max(128 * tile + (2 << 20), 16 << 20), 48 << 20))
    cost = pl.CostEstimate(
        flops=288 * b_pad,                        # (2*8*16 + 2*16) per column
        transcendentals=0,
        bytes_accessed=(int(xt.dtype.itemsize) * 8 + 4) * b_pad
        + 4 * (16 * 8 + 16 + 16 + 1),
    )
    return pl.pallas_call(
        _mlp_kernel,
        out_shape=jax.ShapeDtypeStruct((1, b_pad), jnp.float32),
        grid=grid,
        in_specs=[
            pl.BlockSpec((8, tile), lambda i: (0, i)),       # x^T tile, pipelined
            pl.BlockSpec((16, 8), lambda i: (0, 0)),         # weights: constant maps
            pl.BlockSpec((16, 1), lambda i: (0, 0)),         #   -> VMEM-resident
            pl.BlockSpec((16, 1), lambda i: (0, 0)),
            pl.BlockSpec(memory_space=pltpu.MemorySpace.SMEM),  # b2 scalar in SMEM
        ],
        out_specs=pl.BlockSpec((1, tile), lambda i: (0, i)),    # lane-dense stores
        compiler_params=pltpu.CompilerParams(
            dimension_semantics=("parallel",),               # megacore on v7x
            vmem_limit_bytes=vmem_limit,
            allow_input_fusion=(
                [True, False, False, False, False] if input_fusion else None),
        ),
        cost_estimate=cost,
    )(xt, w1c, b1c, w2c, b2c)


def _cast_params(w1, b1, w2, b2):
    return (w1.astype(jnp.float32),
            b1.astype(jnp.float32).reshape(16, 1),
            w2.astype(jnp.float32).reshape(16, 1),
            b2.astype(jnp.float32).reshape(1, 1))


def regression_model_forward_feature_major(xt, w1, b1, w2, b2, *, tile_b=65536):
    """Preferred entry point: activations already feature-major.

    xt: (8, B), float32 (or bfloat16 to nearly halve HBM read traffic).
    Returns (1, B) float32.  When B % 128 == 0 this does zero wrapper-side
    layout work, so end-to-end traffic equals the kernel's ~36 B/row.
    """
    F, B = xt.shape
    assert F == 8
    tile, b_pad = _choose_tiling(B, tile_b)
    if b_pad != B:
        xt = jnp.pad(xt, ((0, 0), (0, b_pad - B)))   # only when B % 128 != 0
    w1c, b1c, w2c, b2c = _cast_params(w1, b1, w2, b2)
    y = _pallas_forward(xt, w1c, b1c, w2c, b2c, tile, b_pad)
    return y if b_pad == B else y[:, :B]


def regression_model_forward(x, w1, b1, w2, b2, *, tile_b=65536,
                             x_stream_dtype=jnp.float32, try_input_fusion=False):
    """Drop-in PyTorch-layout wrapper: x (B, 8) -> (B, 1) float32.

    PERF NOTE: this path materializes a feature-major copy of x (one extra HBM
    read+write pass) plus a final (B, 1) slice/reshape -- roughly 3x the
    kernel's own traffic.  Keep activations feature-major upstream and call
    `regression_model_forward_feature_major` to stay at the HBM roofline.
    `try_input_fusion=True` asks XLA to fuse the transpose/pad into the
    pallas_call operand instead (check the HLO before relying on it).
    """
    B, F = x.shape
    assert F == 8
    tile, b_pad = _choose_tiling(B, tile_b)
    xt = jnp.zeros((8, b_pad), x_stream_dtype).at[:, :B].set(
        x.astype(x_stream_dtype).T)
    w1c, b1c, w2c, b2c = _cast_params(w1, b1, w2, b2)
    y = _pallas_forward(xt, w1c, b1c, w2c, b2c, tile, b_pad,
                        input_fusion=try_input_fusion)
    return y[0, :B].reshape(B, 1)


def init_params(key):
    # PyTorch nn.Linear default init, in PyTorch parameter layouts.
    k1, k2, k3, k4 = jax.random.split(key, 4)
    bound1 = 1.0 / jnp.sqrt(8.0)
    bound2 = 1.0 / jnp.sqrt(16.0)
    w1 = jax.random.uniform(k1, (16, 8), jnp.float32, -bound1, bound1)
    b1 = jax.random.uniform(k2, (16,), jnp.float32, -bound1, bound1)
    w2 = jax.random.uniform(k3, (1, 16), jnp.float32, -bound2, bound2)
    b2 = jax.random.uniform(k4, (1,), jnp.float32, -bound2, bound2)
    return w1, b1, w2, b2


def _ref_forward(x, w1, b1, w2, b2):
    # Pure-JAX (VPU-only, f32) reference mirroring the PyTorch forward.
    h = jnp.maximum(jnp.sum(x[:, None, :] * w1[None, :, :], axis=-1) + b1, 0.0)
    return jnp.sum(h * w2[0][None, :], axis=-1, keepdims=True) + b2


if __name__ == "__main__":
    key = jax.random.PRNGKey(0)
    kx, kx2, kp = jax.random.split(key, 3)
    w1, b1, w2, b2 = init_params(kp)

    # --- PyTorch-layout compatibility path: B not a multiple of 128, tiny tile
    # forces a multi-step grid (exercises padding + pipelining + resident weights).
    B = 300
    x = jax.random.normal(kx, (B, 8), jnp.float32)
    fwd = jax.jit(functools.partial(regression_model_forward, tile_b=128))
    out = jax.block_until_ready(fwd(x, w1, b1, w2, b2))
    y_ref = _ref_forward(x, w1, b1, w2, b2)
    assert out.shape == (B, 1)
    assert jnp.allclose(out, y_ref, atol=1e-4, rtol=1e-4), float(
        jnp.max(jnp.abs(out - y_ref)))

    # --- Feature-major fast path: zero wrapper-side layout work (B % 128 == 0),
    # 2-step grid so v7x megacore gets one batch tile per TensorCore.
    B2 = 512
    xt2 = jax.random.normal(kx2, (8, B2), jnp.float32)
    fwd_fm = jax.jit(functools.partial(
        regression_model_forward_feature_major, tile_b=256))
    out2 = jax.block_until_ready(fwd_fm(xt2, w1, b1, w2, b2))
    y2_ref = _ref_forward(xt2.T, w1, b1, w2, b2)     # (B2, 1)
    assert out2.shape == (1, B2)
    assert jnp.allclose(out2, y2_ref.T, atol=1e-4, rtol=1e-4), float(
        jnp.max(jnp.abs(out2 - y2_ref.T)))

    print("KERNEL_OK")
</pallas_src>

<mosaic_0001>
module attributes {stable_mosaic.version = 11 : i64} {
  func.func @_mlp_kernel(%arg0: i32, %arg1: memref<8x128xf32, #tpu.memory_space<vmem>>, %arg2: memref<16x8xf32, #tpu.memory_space<vmem>>, %arg3: memref<16x1xf32, #tpu.memory_space<vmem>>, %arg4: memref<16x1xf32, #tpu.memory_space<vmem>>, %arg5: memref<1x1xf32, #tpu.memory_space<smem>>, %arg6: memref<1x128xf32, #tpu.memory_space<vmem>>) attributes {dimension_semantics = [#tpu.dimension_semantics<parallel>], iteration_bounds = array<i64: 3>, scalar_prefetch = 0 : i64, scratch_operands = 0 : i64, tpu.core_type = #tpu.core_type<tc>, window_params = [{transform_indices = @transform_0, window_bounds = array<i64: 8, 128>}, {pipeline_mode = #tpu.pipeline_mode<synchronous>, transform_indices = @transform_1, window_bounds = array<i64: 16, 8>}, {pipeline_mode = #tpu.pipeline_mode<synchronous>, transform_indices = @transform_2, window_bounds = array<i64: 16, 1>}, {pipeline_mode = #tpu.pipeline_mode<synchronous>, transform_indices = @transform_3, window_bounds = array<i64: 16, 1>}, {transform_indices = @transform_4, window_bounds = array<i64: 1, 1>}, {transform_indices = @transform_5, window_bounds = array<i64: 1, 128>}]} {
    %c0 = arith.constant 0 : index
    %c0_0 = arith.constant 0 : index
    %0 = vector.load %arg1[%c0, %c0_0] : memref<8x128xf32, #tpu.memory_space<vmem>>, vector<8x128xf32>
    %c0_1 = arith.constant 0 : index
    %c0_2 = arith.constant 0 : index
    %1 = vector.load %arg2[%c0_1, %c0_2] : memref<16x8xf32, #tpu.memory_space<vmem>>, vector<16x8xf32>
    %cst = arith.constant dense<0.000000e+00> : vector<16x128xf32>
    %2 = tpu.matmul %1, %0, %cst {dimension_numbers = #tpu.dot_dimension_numbers<[1], [0], [0], [1], [0, 0, 1, 1], [], []>, precision = #tpu.contract_precision<fp32>} : vector<16x8xf32>, vector<8x128xf32>, vector<16x128xf32> -> vector<16x128xf32>
    %c0_3 = arith.constant 0 : index
    %c0_4 = arith.constant 0 : index
    %3 = vector.load %arg3[%c0_3, %c0_4] : memref<16x1xf32, #tpu.memory_space<vmem>>, vector<16x1xf32>
    %4 = vector.broadcast %3 : vector<16x1xf32> to vector<16x128xf32>
    %5 = arith.addf %2, %4 : vector<16x128xf32>
    %cst_5 = arith.constant 0.000000e+00 : f32
    %6 = vector.broadcast %cst_5 : f32 to vector<16x128xf32>
    %7 = arith.maximumf %5, %6 : vector<16x128xf32>
    %c0_6 = arith.constant 0 : index
    %c0_7 = arith.constant 0 : index
    %8 = vector.load %arg4[%c0_6, %c0_7] : memref<16x1xf32, #tpu.memory_space<vmem>>, vector<16x1xf32>
    %9 = vector.broadcast %8 : vector<16x1xf32> to vector<16x128xf32>
    %10 = arith.mulf %7, %9 : vector<16x128xf32>
    %cst_8 = arith.constant dense<0.000000e+00> : vector<128xf32>
    %11 = vector.multi_reduction <add>, %10, %cst_8 [0] : vector<16x128xf32> to vector<128xf32>
    %12 = vector.shape_cast %11 : vector<128xf32> to vector<1x128xf32>
    %c0_9 = arith.constant 0 : index
    %c0_10 = arith.constant 0 : index
    %13 = memref.load %arg5[%c0_9, %c0_10] : memref<1x1xf32, #tpu.memory_space<smem>>
    %14 = vector.broadcast %13 : f32 to vector<1x128xf32>
    %15 = arith.addf %12, %14 : vector<1x128xf32>
    %c0_11 = arith.constant 0 : index
    %c0_12 = arith.constant 0 : index
    %16 = vector.load %arg6[%c0_11, %c0_12] : memref<1x128xf32, #tpu.memory_space<vmem>>, vector<1x128xf32>
    tpu.vector_store %arg6[%c0_11, %c0_12], %15 {strides = array<i32>} : memref<1x128xf32, #tpu.memory_space<vmem>>, vector<1x128xf32>,
    return
  }
  func.func @transform_0(%arg0: i32) -> (i32, i32) {
    %c0_i32 = arith.constant 0 : i32
    %c0_i32_0 = arith.constant 0 : i32
    return %c0_i32, %arg0 : i32, i32
  }
  func.func @transform_1(%arg0: i32) -> (i32, i32) {
    %c0_i32 = arith.constant 0 : i32
    %c0_i32_0 = arith.constant 0 : i32
    %c0_i32_1 = arith.constant 0 : i32
    return %c0_i32, %c0_i32_0 : i32, i32
  }
  func.func @transform_2(%arg0: i32) -> (i32, i32) {
    %c0_i32 = arith.constant 0 : i32
    %c0_i32_0 = arith.constant 0 : i32
    %c0_i32_1 = arith.constant 0 : i32
    return %c0_i32, %c0_i32_0 : i32, i32
  }
  func.func @transform_3(%arg0: i32) -> (i32, i32) {
    %c0_i32 = arith.constant 0 : i32
    %c0_i32_0 = arith.constant 0 : i32
    %c0_i32_1 = arith.constant 0 : i32
    return %c0_i32, %c0_i32_0 : i32, i32
  }
  func.func @transform_4(%arg0: i32) -> (i32, i32) {
    %c0_i32 = arith.constant 0 : i32
    %c0_i32_0 = arith.constant 0 : i32
    %c0_i32_1 = arith.constant 0 : i32
    return %c0_i32, %c0_i32_0 : i32, i32
  }
  func.func @transform_5(%arg0: i32) -> (i32, i32) {
    %c0_i32 = arith.constant 0 : i32
    %c0_i32_0 = arith.constant 0 : i32
    return %c0_i32, %arg0 : i32, i32
  }
}

</mosaic_0001>

<bundles_post_ra>
// kernel: regression_model_forward.1
= control target key start
LH: loop header
LB: loop body
LE: loop exit
PB: predicated region body
PF: predicated region fallthrough
CT: control target
= control target key end

     0   :  { %s925_s20 = smov 0   ;;  %s964_s0 = inlined_call_operand.vmem [shape: f32[8,384], index: 0, kind: input, shape index: {}]   ;;  %s965_s1 = inlined_call_operand.vmem [shape: f32[16,8], index: 1, kind: input, shape index: {}]   ;;  %s966_s2 = inlined_call_operand.vmem [shape: f32[16,1], index: 2, kind: input, shape index: {}]   ;;  %s967_s3 = inlined_call_operand.vmem [shape: f32[16,1], index: 3, kind: input, shape index: {}]   ;;  %s968_s4 = inlined_call_operand.<no memory space> [shape: f32[1,1], index: 4, kind: input, shape index: {}]   ;;  %s969_s5 = inlined_call_operand.vmem [shape: f32[1,384], index: 5, kind: output, shape index: {}]  }
   0x1   :  { %10 = sst [smem:[#allocation2]] %s968_s4 }
   0x2 LB: > { %s804_s21 = sadd.s32 4294967295, %s889_s20   ;;  %p808_p0 = scmp.ge.s32.totalorder %s889_s20, 1  ;;  %s889_s20 = sphi %s925_s20, %s16_s20  }
   0x3   : > { %p187_p1 = scmp.lt.s32.totalorder %s889_s20, 4 }
   0x5   : > { %p188_p2 = pnand %p808_p0, %p187_p1 }
   0x6   : > { %p212_p3 = scmp.lt.s32.totalorder (!%p188_p2), %s804_s21, 2  ;;  %v220_v0 = vld [vmem:[%s965_s1] sm:$0xff] (!%p188_p2)  ;;  %v221_v1 = vld [vmem:[%s965_s1 + $0x8] sm:$0xff] (!%p188_p2)  ;;  %vm234_vm0 = vcmask (!%p188_p2), 64512   ;;  %v891_v5 = vmov (!%p188_p2), 0   ;;  %s753_s12 = sld [smem:[#allocation2]] (!%p188_p2) }
   0x7   : > { %191 = sbr.rel (%p188_p2) target bundleno = 278 (0x116), region = 40  ;;  %v222_v2 = vld [vmem:[%s966_s2] sm:$0xff] (!%p188_p2)  ;;  %v236_v3 = vsel (!%p188_p2), %vm234_vm0, %v220_v0, 0  ;;  %v239_v4 = vsel (!%p188_p2), %vm234_vm0, %v221_v1, 0  ;;  %881 = vset.pattern.permute.xlu0 (!%p188_p2), %v891_v5  ;;  %882 = vset.pattern.permute.xlu1 (!%p188_p2), %v891_v5  ;;  %v223_v9 = vld [vmem:[%s966_s2 + $0x8] sm:$0xff] (!%p188_p2) }
   0x8   : > { %v732_v6 = vld [vmem:[%s967_s3] sm:$0xff] (!%p188_p2)  ;;  %v307_v7 = vand.u32 (!%p188_p2), 4294901760, %v236_v3  ;;  %v317_v8 = vand.u32 (!%p188_p2), 4294901760, %v239_v4  ;;  %226 = vperm.xlu0 (!%p188_p2), %881, %v222_v2   ;;  %v733_v10 = vld [vmem:[%s967_s3 + $0x8] sm:$0xff] (!%p188_p2) }
   0x9   : > { %736 = vperm.xlu1 (!%p188_p2), %882, %v732_v6  }
   0xa   : > { %v308_v11 = vsub.f32 (!%p188_p2), %v236_v3, %v307_v7  ;;  %v318_v12 = vsub.f32 (!%p188_p2), %v239_v4, %v317_v8 }
   0xc   : > { %v309_v14 = vand.u32 (!%p188_p2), 4294901760, %v308_v11  ;;  %v319_v15 = vand.u32 (!%p188_p2), 4294901760, %v318_v12  ;;  %231 = vperm.xlu0 (!%p188_p2), %881, %v223_v9   ;;  %v754_v47 = vstv (!%p188_p2), %s753_s12 }
   0xd   : > { %741 = vperm.xlu1 (!%p188_p2), %882, %v733_v10  }
   0xe   : > { %s971_s21 = smov (!%p212_p3, %s804_s21), 2  ;;  %847 = vmatprep.mubr.f32.mxu0 %v309_v14  ;;  %v310_v17 = vsub.f32 %v308_v11, %v309_v14  ;;  %v320_v18 = vsub.f32 %v318_v12, %v319_v15 }
   0xf   : > { %s809_s8 = sshll.u32 %s971_s21, 3  ;;  %s218_s15 = scalar_lea.vmem %s969_s5, %s971_s21 }
  0x10   : > { %s215_s11 = scalar_lea.vmem %s964_s0, %s809_s8  ;;  %v311_v20 = vand.u32 4294901760, %v310_v17  ;;  %v321_v21 = vand.u32 4294901760, %v320_v18 }
  0x11   : > { %v219_v13 = vld [vmem:[%s215_s11] sm:$0xff] }
  0x12   : > { %v242_v16 = vand.u32 4294901760, %v219_v13  ;;  %832 = vmatprep.mubr.f32.mxu1 %v311_v20 }
  0x14   : > { %845 = vmatprep.subr.mxu0 %v242_v16  ;;  %830 = vmatprep.subr.mxu1 %v242_v16  ;;  %v329_v19 = vsub.f32 %v219_v13, %v242_v16 }
  0x15   : > { %846 = vmatpush3.msra.mxu0 %v242_v16  ;;  %831 = vmatpush3.msra.mxu1 %v242_v16 }
  0x16   : > { %848 = vmatmul.mubr.f32.vlgmr.msra.gmra.mrb[0].mxu0 %v319_v15  ;;  %v330_v22 = vand.u32 4294901760, %v329_v19  ;;  %833 = vmatmul.mubr.f32.vlgmr.msra.gmra.mrb[0].mxu1 %v321_v21 }
  0x17   : > { %852 = vmatprep.mubr.f32.mxu0 %v307_v7  ;;  %837 = vmatprep.mubr.f32.mxu1 %v307_v7 }
  0x18   : > { %v331_v23 = vsub.f32 %v329_v19, %v330_v22  ;;  %850 = vmatprep.subr.mxu0 %v330_v22 }
  0x19   : > { %851 = vmatpush3.msra.mxu0 %v330_v22 }
  0x1a   : > { %v332_v24 = vand.u32 4294901760, %v331_v23  ;;  %855 = vmatprep.subr.mxu0 %v242_v16 }
  0x1c   : > { %835 = vmatprep.subr.mxu1 %v332_v24 }
  0x1d   : > { %836 = vmatpush3.msra.mxu1 %v332_v24 }
  0x1e   : > { %853 = vmatmul.mubr.f32.vlgmr.msra.gmra.mrb[0].mxu0 %v317_v8  ;;  %840 = vmatprep.subr.mxu1 %v329_v19 }
  0x1f   : > { %856 = vmatpush3.msra.mxu0 %v242_v16  ;;  %857 = vmatprep.mubr.f32.mxu0 %v307_v7 }
  0x20   : > { %838 = vmatmul.mubr.f32.vlgmr.msra.gmra.mrb[0].mxu1 %v317_v8 }
  0x21   : > { %841 = vmatpush3.msra.mxu1 %v329_v19  ;;  %842 = vmatprep.mubr.f32.mxu1 %v308_v11 }
  0x26   : > { %858 = vmatmul.mubr.f32.vlgmr.msra.gmra.mrb[0].mxu0 %v317_v8 }
  0x28   : > { %843 = vmatmul.mubr.f32.vlgmr.msra.gmra.mrb[0].mxu1 %v318_v12 }
  0x87   : > { %v227_v25 = vpop.permute.xlu0 %226 }
  0x88   : > { %v737_v28 = vpop.permute.xlu1 %736 }
  0x8b   : > { %v232_v29 = vpop.permute.xlu0 %231 }
  0x8c   : > { %v742_v38 = vpop.permute.xlu1 %741 }
  0xf9   : > { %v859_v26 = vpop.f32.mrb[0].mxu0 }
  0xfa   : > { %v720_v27 = vpop.f32.mrb[1].mxu0 }
  0xfb   : > { %v844_v30 = vpop.f32.mrb[0].mxu1 }
  0xfc   : > { %v860_v31 = vadd.f32 %v844_v30, %v232_v29  ;;  %v479_v32 = vpop.f32.mrb[1].mxu1 }
  0xfd   : > { %v862_v33 = vadd.f32 %v479_v32, %v227_v25 }
  0xfe   : > { %v861_v34 = vadd.f32 %v860_v31, %v859_v26 }
  0xff   : > { %v863_v35 = vadd.f32 %v862_v33, %v720_v27 }
 0x100   : > { %v731_v36 = vmax.f32 %v861_v34, 0.0 }
 0x101   : > { %v730_v37 = vmax.f32 %v863_v35, 0.0 }
 0x102   : > { %v745_v39 = vmul.f32 %v742_v38, %v731_v36 }
 0x103   : > { %v744_v40 = vmul.f32 %v737_v28, %v730_v37 }
 0x105   : > { %v746_v41 = vadd.f32 %v745_v39, %v744_v40 }
 0x107   : > { %v747_v42 = vrot.slane %v746_v41, 4 }
 0x109   : > { %v748_v43 = vadd.f32 %v747_v42, %v746_v41 }
 0x10b   : > { %v749_v44 = vrot.slane %v748_v43, 2 }
 0x10d   : > { %v750_v45 = vadd.f32 %v749_v44, %v748_v43 }
 0x10f   : > { %v751_v46 = vrot.slane %v750_v45, 1 }
 0x111   : > { %v752_v48 = vadd.f32 %v751_v46, %v750_v45 }
 0x113   : > { %v755_v49 = vadd.f32 %v754_v47, %v752_v48 }
 0x115   : > { %756 = vst [vmem:[%s218_s15] sm:$0x1] %v755_v49 }
 0x116 PF: > { %s16_s20 = sadd.s32 1, %s889_s20  }
 0x117   : > { %p13_p4 = scmp.ge.s32.totalorder %s16_s20, 5  }
 0x119   :  { %15 = sbr.rel (!%p13_p4) target bundleno = 2 (0x2), region = 70 }

</bundles_post_ra>
